<compile_context>
chip_gen: v5e
topology: v5e:2x2
jax: 0.10.0
libtpu: 0.0.40
codegen_flags: <defaults>
</compile_context>

<pallas_src>
import functools

import jax
import jax.numpy as jnp
from jax.experimental import pallas as pl
from jax.experimental.pallas import tpu as pltpu


def _attention_kernel(nf_ref, packed_ref, w_attn_ref, pi_ref, *,
                      n_valid, n_pad, n_feat, tb):
    """Pointer attention for one block of TB batches.

    Layout: hidden dim H on sublanes, (batch-in-block, node) flattened on lanes.
      nf_ref:     (1, F, TB*N_pad)   node features, nodes on the lane axis
      packed_ref: (H8, F+3)          [w_emb | b_emb | v | hx]
      w_attn_ref: (H8, H8)           attn_W.weight
      pi_ref:     (TB, N_pad)        per-batch softmax rows
    """
    nf = nf_ref[0]                               # (F, TB*N_pad)
    packed = packed_ref[...]                     # (H8, F+3)
    f = n_feat

    b_emb = packed[:, f:f + 1]                   # (H8, 1) embedding.bias
    v_col = packed[:, f + 1:f + 2]               # (H8, 1) self.v
    hx_col = packed[:, f + 2:f + 3]              # (H8, 1) decoder hx (hoisted)

    # --- node embedding: Linear(F -> H) + ReLU, K=4 contraction on the VPU ---
    emb = b_emb + packed[:, 0:1] * nf[0:1, :]    # (H8, TB*N_pad)
    for k in range(1, f):                        # static unroll, F = 4
        emb = emb + packed[:, k:k + 1] * nf[k:k + 1, :]
    emb = jnp.maximum(emb, 0.0)

    # --- additive pointer attention: one wide MXU matmul for the whole block ---
    wemb = jnp.dot(w_attn_ref[...], emb,
                   preferred_element_type=jnp.float32)      # (H8, TB*N_pad)
    s = jnp.tanh(wemb + hx_col)                             # EUP
    logits = jnp.sum(s * v_col, axis=0, keepdims=True)      # (1, TB*N_pad)

    # --- per-batch softmax over node lanes (each batch owns N_pad lanes) ---
    lane = jax.lax.broadcasted_iota(jnp.int32, (1, n_pad), 1)
    valid = lane < n_valid                       # hoisted out of the loop
    for b in range(tb):                          # static unroll
        lg = logits[:, b * n_pad:(b + 1) * n_pad]            # (1, N_pad)
        lg = jnp.where(valid, lg, -1e30)
        m = jnp.max(lg, axis=-1, keepdims=True)
        e = jnp.exp(lg - m)                                   # padded lanes -> 0
        d = jnp.sum(e, axis=-1, keepdims=True)
        r = pl.reciprocal(d, approx=True)                     # EUP slot
        r = r * (2.0 - d * r)                                 # Newton -> f32 acc
        pi_ref[b:b + 1, :] = e * r                            # lane-dense row


def _decoder_state(params):
    """LSTMCell(query) with h0 = c0 = 0 -> hx.  Input-independent (hoisted)."""
    H = params["query"].shape[-1]
    gates = params["query"] @ params["w_ih"] + params["b_lstm"]   # (1, 4H)
    i_g = jax.nn.sigmoid(gates[:, 0:H])            # input gate
    g_g = jnp.tanh(gates[:, 2 * H:3 * H])          # cell candidate
    o_g = jax.nn.sigmoid(gates[:, 3 * H:4 * H])    # output gate
    cx = i_g * g_g                                 # c0 = 0 -> forget gate drops
    return o_g * jnp.tanh(cx)                      # hx, (1, H)


def init_params(key, hidden_dim):
    F = 4  # node_feature_size
    ks = jax.random.split(key, 10)
    n = lambda k, s: (0.1 * jax.random.normal(k, s)).astype(jnp.float32)
    return {
        "w_emb": n(ks[0], (hidden_dim, F)),              # embedding.weight [out, in]
        "b_emb": n(ks[1], (hidden_dim,)),                # embedding.bias
        "query": n(ks[2], (1, hidden_dim)),              # self.query
        "w_ih": n(ks[3], (hidden_dim, 4 * hidden_dim)),  # decoder_rnn.weight_ih^T
        # b_lstm = bias_ih + bias_hh (both always added by LSTMCell)
        "b_lstm": n(ks[4], (1, 4 * hidden_dim)) + n(ks[5], (1, 4 * hidden_dim)),
        "w_attn": n(ks[6], (hidden_dim, hidden_dim)),    # attn_W.weight [out, in]
        "v": n(ks[7], (hidden_dim,)),                    # self.v
        "w_val": n(ks[8], (hidden_dim, 1)),              # value_head.weight^T
        "b_val": n(ks[9], (1, 1)),                       # value_head.bias
    }
    # TODO(synk): decoder_rnn.weight_hh is never used in this forward (h0 = 0),
    # so it is intentionally not materialized.


def tsp_pointer_forward(node_features, adjacency_matrix, params, *, batch_block=8):
    """node_features: [B, N, 4]; adjacency_matrix: [B, N, N] (unused)."""
    del adjacency_matrix  # unused, matching the PyTorch forward
    node_features = node_features.astype(jnp.float32)
    B, N, F = node_features.shape
    H = params["query"].shape[-1]
    H8 = pl.cdiv(H, 8) * 8                 # sublane alignment only
    N_pad = pl.cdiv(N, 128) * 128          # lane alignment per batch segment
    # TB must be a multiple of 8 or equal to the whole (padded) batch to satisfy
    # the (8, 128) BlockSpec rule on the output; batch_block=8 guarantees this.
    TB = min(batch_block, B)
    B_pad = pl.cdiv(B, TB) * TB
    num_blocks = B_pad // TB

    # --- input-independent branch, hoisted out of the kernel ---
    hx = _decoder_state(params)                              # (1, H)
    val = jnp.broadcast_to(hx @ params["w_val"] + params["b_val"], (B, 1))

    # --- pack & zero-pad the small per-hidden vectors into one array ---
    def pad_h(x):
        return jnp.pad(x, ((0, H8 - H), (0, 0)))

    packed = jnp.concatenate([
        pad_h(params["w_emb"]),                 # cols [0, F): embedding.weight
        pad_h(params["b_emb"].reshape(H, 1)),   # col  F     : embedding.bias
        pad_h(params["v"].reshape(H, 1)),       # col  F + 1 : v
        pad_h(hx.reshape(H, 1)),                # col  F + 2 : decoder hx
    ], axis=1)                                  # (H8, F + 3)
    w_attn = jnp.pad(params["w_attn"], ((0, H8 - H), (0, H8 - H)))

    # node features: (B, N, F) -> (num_blocks, F, TB*N_pad), nodes on lanes,
    # TB batches stacked along the lane axis (zero-padded batches are harmless
    # and sliced off below).
    nf = jnp.pad(node_features, ((0, B_pad - B), (0, N_pad - N), (0, 0)))
    nf = jnp.transpose(nf, (0, 2, 1))                        # (B_pad, F, N_pad)
    nf = nf.reshape(num_blocks, TB, F, N_pad)
    nf = jnp.transpose(nf, (0, 2, 1, 3)).reshape(num_blocks, F, TB * N_pad)

    kernel = functools.partial(_attention_kernel, n_valid=N, n_pad=N_pad,
                               n_feat=F, tb=TB)
    pi_pad = pl.pallas_call(
        kernel,
        out_shape=jax.ShapeDtypeStruct((B_pad, N_pad), jnp.float32),
        grid=(num_blocks,),
        in_specs=[
            pl.BlockSpec((1, F, TB * N_pad), lambda g: (g, 0, 0)),  # node block
            pl.BlockSpec((H8, F + 3), lambda g: (0, 0)),            # resident
            pl.BlockSpec((H8, H8), lambda g: (0, 0)),               # resident
        ],
        out_specs=pl.BlockSpec((TB, N_pad), lambda g: (g, 0)),
        compiler_params=pltpu.CompilerParams(
            dimension_semantics=("parallel",)),                     # 2 TCs on v7x
    )(nf, packed, w_attn)

    return pi_pad[:B, :N], val


def reference_forward(node_features, params):
    """Pure-JAX reference mirroring the PyTorch forward."""
    node_features = node_features.astype(jnp.float32)
    B, N, _ = node_features.shape
    hp = jax.lax.Precision.HIGHEST
    emb = jax.nn.relu(jnp.einsum("bnf,hf->bnh", node_features, params["w_emb"],
                                 precision=hp) + params["b_emb"])
    hx = _decoder_state(params)                              # (1, H)
    wemb = jnp.einsum("bnh,oh->bno", emb, params["w_attn"], precision=hp)
    sum_emb = jnp.tanh(wemb + hx[:, None, :])
    logits = jnp.einsum("bnh,h->bn", sum_emb, params["v"], precision=hp)
    pi = jax.nn.softmax(logits, axis=-1)
    val = jnp.broadcast_to(hx @ params["w_val"] + params["b_val"], (B, 1))
    return pi, val


if __name__ == "__main__":
    B, N, F, H = 2, 8, 4, 32

    key = jax.random.PRNGKey(0)
    k_feat, k_adj, k_par = jax.random.split(key, 3)

    node_features = jax.random.uniform(k_feat, (B, N, F), dtype=jnp.float32)
    adjacency = jax.random.uniform(k_adj, (B, N, N), dtype=jnp.float32)
    params = init_params(k_par, H)

    fwd = jax.jit(tsp_pointer_forward)
    pi, v = fwd(node_features, adjacency, params)
    jax.block_until_ready((pi, v))

    assert pi.shape == (B, N) and v.shape == (B, 1)
    assert bool(jnp.all(jnp.isfinite(pi))) and bool(jnp.all(jnp.isfinite(v)))
    # softmax rows should sum to ~1
    assert bool(jnp.allclose(jnp.sum(pi, axis=-1), 1.0, atol=1e-4))

    # compare against the pure-JAX reference
    pi_ref, v_ref = reference_forward(node_features, params)
    assert bool(jnp.allclose(pi, pi_ref, atol=2e-3, rtol=2e-3))
    assert bool(jnp.allclose(v, v_ref, atol=2e-3, rtol=2e-3))
    print("KERNEL_OK")
</pallas_src>

<mosaic_0001>
module attributes {stable_mosaic.version = 11 : i64} {
  func.func @_attention_kernel(%arg0: i32, %arg1: memref<1x4x256xf32, #tpu.memory_space<vmem>>, %arg2: memref<32x7xf32, #tpu.memory_space<vmem>>, %arg3: memref<32x32xf32, #tpu.memory_space<vmem>>, %arg4: memref<2x128xf32, #tpu.memory_space<vmem>>) attributes {dimension_semantics = [#tpu.dimension_semantics<parallel>], iteration_bounds = array<i64: 1>, scalar_prefetch = 0 : i64, scratch_operands = 0 : i64, tpu.core_type = #tpu.core_type<tc>, window_params = [{transform_indices = @transform_0, window_bounds = array<i64: 1, 4, 256>}, {pipeline_mode = #tpu.pipeline_mode<synchronous>, transform_indices = @transform_1, window_bounds = array<i64: 32, 7>}, {pipeline_mode = #tpu.pipeline_mode<synchronous>, transform_indices = @transform_2, window_bounds = array<i64: 32, 32>}, {transform_indices = @transform_3, window_bounds = array<i64: 2, 128>}]} {
    %c0 = arith.constant 0 : index
    %c0_0 = arith.constant 0 : index
    %c0_1 = arith.constant 0 : index
    %0 = vector.load %arg1[%c0, %c0_0, %c0_1] : memref<1x4x256xf32, #tpu.memory_space<vmem>>, vector<1x4x256xf32>
    %1 = vector.shape_cast %0 : vector<1x4x256xf32> to vector<4x256xf32>
    %c0_2 = arith.constant 0 : index
    %c0_3 = arith.constant 0 : index
    %2 = vector.load %arg2[%c0_2, %c0_3] : memref<32x7xf32, #tpu.memory_space<vmem>>, vector<32x7xf32>
    %3 = vector.extract_strided_slice %2 {offsets = [0, 4], sizes = [32, 1], strides = [1, 1]} : vector<32x7xf32> to vector<32x1xf32>
    %4 = vector.extract_strided_slice %2 {offsets = [0, 5], sizes = [32, 1], strides = [1, 1]} : vector<32x7xf32> to vector<32x1xf32>
    %5 = vector.extract_strided_slice %2 {offsets = [0, 6], sizes = [32, 1], strides = [1, 1]} : vector<32x7xf32> to vector<32x1xf32>
    %6 = vector.extract_strided_slice %2 {offsets = [0, 0], sizes = [32, 1], strides = [1, 1]} : vector<32x7xf32> to vector<32x1xf32>
    %7 = vector.extract_strided_slice %1 {offsets = [0, 0], sizes = [1, 256], strides = [1, 1]} : vector<4x256xf32> to vector<1x256xf32>
    %8 = vector.broadcast %6 : vector<32x1xf32> to vector<32x256xf32>
    %9 = vector.broadcast %7 : vector<1x256xf32> to vector<32x256xf32>
    %10 = arith.mulf %8, %9 : vector<32x256xf32>
    %11 = vector.broadcast %3 : vector<32x1xf32> to vector<32x256xf32>
    %12 = arith.addf %11, %10 : vector<32x256xf32>
    %13 = vector.extract_strided_slice %2 {offsets = [0, 1], sizes = [32, 1], strides = [1, 1]} : vector<32x7xf32> to vector<32x1xf32>
    %14 = vector.extract_strided_slice %1 {offsets = [1, 0], sizes = [1, 256], strides = [1, 1]} : vector<4x256xf32> to vector<1x256xf32>
    %15 = vector.broadcast %13 : vector<32x1xf32> to vector<32x256xf32>
    %16 = vector.broadcast %14 : vector<1x256xf32> to vector<32x256xf32>
    %17 = arith.mulf %15, %16 : vector<32x256xf32>
    %18 = arith.addf %12, %17 : vector<32x256xf32>
    %19 = vector.extract_strided_slice %2 {offsets = [0, 2], sizes = [32, 1], strides = [1, 1]} : vector<32x7xf32> to vector<32x1xf32>
    %20 = vector.extract_strided_slice %1 {offsets = [2, 0], sizes = [1, 256], strides = [1, 1]} : vector<4x256xf32> to vector<1x256xf32>
    %21 = vector.broadcast %19 : vector<32x1xf32> to vector<32x256xf32>
    %22 = vector.broadcast %20 : vector<1x256xf32> to vector<32x256xf32>
    %23 = arith.mulf %21, %22 : vector<32x256xf32>
    %24 = arith.addf %18, %23 : vector<32x256xf32>
    %25 = vector.extract_strided_slice %2 {offsets = [0, 3], sizes = [32, 1], strides = [1, 1]} : vector<32x7xf32> to vector<32x1xf32>
    %26 = vector.extract_strided_slice %1 {offsets = [3, 0], sizes = [1, 256], strides = [1, 1]} : vector<4x256xf32> to vector<1x256xf32>
    %27 = vector.broadcast %25 : vector<32x1xf32> to vector<32x256xf32>
    %28 = vector.broadcast %26 : vector<1x256xf32> to vector<32x256xf32>
    %29 = arith.mulf %27, %28 : vector<32x256xf32>
    %30 = arith.addf %24, %29 : vector<32x256xf32>
    %cst = arith.constant 0.000000e+00 : f32
    %31 = vector.broadcast %cst : f32 to vector<32x256xf32>
    %32 = arith.maximumf %30, %31 : vector<32x256xf32>
    %c0_4 = arith.constant 0 : index
    %c0_5 = arith.constant 0 : index
    %33 = vector.load %arg3[%c0_4, %c0_5] : memref<32x32xf32, #tpu.memory_space<vmem>>, vector<32x32xf32>
    %cst_6 = arith.constant dense<0.000000e+00> : vector<32x256xf32>
    %34 = tpu.matmul %33, %32, %cst_6 {dimension_numbers = #tpu.dot_dimension_numbers<[1], [0], [0], [1], [0, 0, 1, 1], [], []>} : vector<32x32xf32>, vector<32x256xf32>, vector<32x256xf32> -> vector<32x256xf32>
    %35 = vector.broadcast %5 : vector<32x1xf32> to vector<32x256xf32>
    %36 = arith.addf %34, %35 : vector<32x256xf32>
    %37 = math.tanh %36 : vector<32x256xf32>
    %38 = vector.broadcast %4 : vector<32x1xf32> to vector<32x256xf32>
    %39 = arith.mulf %37, %38 : vector<32x256xf32>
    %cst_7 = arith.constant dense<0.000000e+00> : vector<256xf32>
    %40 = vector.multi_reduction <add>, %39, %cst_7 [0] : vector<32x256xf32> to vector<256xf32>
    %41 = vector.shape_cast %40 : vector<256xf32> to vector<1x256xf32>
    %42 = tpu.iota {dimensions = array<i32: 1>} : vector<1x128xi32>
    %c8_i32 = arith.constant 8 : i32
    %43 = vector.broadcast %c8_i32 : i32 to vector<1x128xi32>
    %44 = arith.cmpi slt, %42, %43 : vector<1x128xi32>
    %45 = vector.extract_strided_slice %41 {offsets = [0, 0], sizes = [1, 128], strides = [1, 1]} : vector<1x256xf32> to vector<1x128xf32>
    %cst_8 = arith.constant -1.000000e+30 : f32
    %46 = vector.broadcast %cst_8 : f32 to vector<1x128xf32>
    %47 = arith.select %44, %45, %46 : vector<1x128xi1>, vector<1x128xf32>
    %cst_9 = arith.constant dense<0xFF800000> : vector<1xf32>
    %48 = vector.multi_reduction <maximumf>, %47, %cst_9 [1] : vector<1x128xf32> to vector<1xf32>
    %49 = vector.shape_cast %48 : vector<1xf32> to vector<1x1xf32>
    %50 = vector.broadcast %49 : vector<1x1xf32> to vector<1x128xf32>
    %51 = arith.subf %47, %50 : vector<1x128xf32>
    %52 = math.exp %51 : vector<1x128xf32>
    %cst_10 = arith.constant dense<0.000000e+00> : vector<1xf32>
    %53 = vector.multi_reduction <add>, %52, %cst_10 [1] : vector<1x128xf32> to vector<1xf32>
    %54 = vector.shape_cast %53 : vector<1xf32> to vector<1x1xf32>
    %55 = tpu.reciprocal %54 {approx = true} : vector<1x1xf32> -> vector<1x1xf32>
    %56 = arith.mulf %54, %55 : vector<1x1xf32>
    %cst_11 = arith.constant 2.000000e+00 : f32
    %57 = vector.broadcast %cst_11 : f32 to vector<1x1xf32>
    %58 = arith.subf %57, %56 : vector<1x1xf32>
    %59 = arith.mulf %55, %58 : vector<1x1xf32>
    %60 = vector.broadcast %59 : vector<1x1xf32> to vector<1x128xf32>
    %61 = arith.mulf %52, %60 : vector<1x128xf32>
    %c0_12 = arith.constant 0 : index
    %c0_13 = arith.constant 0 : index
    %62 = vector.load %arg4[%c0_12, %c0_13] : memref<2x128xf32, #tpu.memory_space<vmem>>, vector<1x128xf32>
    tpu.vector_store %arg4[%c0_12, %c0_13], %61 {strides = array<i32>} : memref<2x128xf32, #tpu.memory_space<vmem>>, vector<1x128xf32>,
    %63 = vector.extract_strided_slice %41 {offsets = [0, 128], sizes = [1, 128], strides = [1, 1]} : vector<1x256xf32> to vector<1x128xf32>
    %cst_14 = arith.constant -1.000000e+30 : f32
    %64 = vector.broadcast %cst_14 : f32 to vector<1x128xf32>
    %65 = arith.select %44, %63, %64 : vector<1x128xi1>, vector<1x128xf32>
    %cst_15 = arith.constant dense<0xFF800000> : vector<1xf32>
    %66 = vector.multi_reduction <maximumf>, %65, %cst_15 [1] : vector<1x128xf32> to vector<1xf32>
    %67 = vector.shape_cast %66 : vector<1xf32> to vector<1x1xf32>
    %68 = vector.broadcast %67 : vector<1x1xf32> to vector<1x128xf32>
    %69 = arith.subf %65, %68 : vector<1x128xf32>
    %70 = math.exp %69 : vector<1x128xf32>
    %cst_16 = arith.constant dense<0.000000e+00> : vector<1xf32>
    %71 = vector.multi_reduction <add>, %70, %cst_16 [1] : vector<1x128xf32> to vector<1xf32>
    %72 = vector.shape_cast %71 : vector<1xf32> to vector<1x1xf32>
    %73 = tpu.reciprocal %72 {approx = true} : vector<1x1xf32> -> vector<1x1xf32>
    %74 = arith.mulf %72, %73 : vector<1x1xf32>
    %cst_17 = arith.constant 2.000000e+00 : f32
    %75 = vector.broadcast %cst_17 : f32 to vector<1x1xf32>
    %76 = arith.subf %75, %74 : vector<1x1xf32>
    %77 = arith.mulf %73, %76 : vector<1x1xf32>
    %78 = vector.broadcast %77 : vector<1x1xf32> to vector<1x128xf32>
    %79 = arith.mulf %70, %78 : vector<1x128xf32>
    %c1 = arith.constant 1 : index
    %c0_18 = arith.constant 0 : index
    %80 = vector.load %arg4[%c1, %c0_18] : memref<2x128xf32, #tpu.memory_space<vmem>>, vector<1x128xf32>
    tpu.vector_store %arg4[%c1, %c0_18], %79 {strides = array<i32>} : memref<2x128xf32, #tpu.memory_space<vmem>>, vector<1x128xf32>,
    return
  }
  func.func @transform_0(%arg0: i32) -> (i32, i32, i32) {
    %c0_i32 = arith.constant 0 : i32
    %c0_i32_0 = arith.constant 0 : i32
    %c0_i32_1 = arith.constant 0 : i32
    return %arg0, %c0_i32, %c0_i32_0 : i32, i32, i32
  }
  func.func @transform_1(%arg0: i32) -> (i32, i32) {
    %c0_i32 = arith.constant 0 : i32
    %c0_i32_0 = arith.constant 0 : i32
    %c0_i32_1 = arith.constant 0 : i32
    return %c0_i32, %c0_i32_0 : i32, i32
  }
  func.func @transform_2(%arg0: i32) -> (i32, i32) {
    %c0_i32 = arith.constant 0 : i32
    %c0_i32_0 = arith.constant 0 : i32
    %c0_i32_1 = arith.constant 0 : i32
    return %c0_i32, %c0_i32_0 : i32, i32
  }
  func.func @transform_3(%arg0: i32) -> (i32, i32) {
    %c0_i32 = arith.constant 0 : i32
    %c0_i32_0 = arith.constant 0 : i32
    return %arg0, %c0_i32 : i32, i32
  }
}

</mosaic_0001>

<bundles_post_ra>
// kernel: tsp_pointer_forward.1
= control target key start
LH: loop header
LB: loop body
LE: loop exit
PB: predicated region body
PF: predicated region fallthrough
CT: control target
= control target key end

     0   :  { %v488_v2 = vmov 4   ;;  %v489_v3 = vmov 0   ;;  %s646_s0 = inlined_call_operand.vmem [shape: f32[1,4,256], index: 0, kind: input, shape index: {}]   ;;  %s647_s1 = inlined_call_operand.vmem [shape: f32[32,7], index: 1, kind: input, shape index: {}]   ;;  %s648_s2 = inlined_call_operand.vmem [shape: f32[32,32], index: 2, kind: input, shape index: {}]   ;;  %s649_s3 = inlined_call_operand.hbm [shape: f32[2,128], index: 3, kind: output, shape index: {}]  }
   0x1   :  { %v519_v0 = vld [vmem:[%s647_s1 + $0x18] sm:$0xff]  ;;  %v524_v1 = vld [vmem:[%s647_s1 + $0x8] sm:$0xff]  ;;  %414 = vset.pattern.permute.xlu1 %v488_v2  ;;  %413 = vset.pattern.permute.xlu0 %v489_v3 }
   0x2   :  { %8 = vsyncpa [#allocation3], 0  ;;  %416 = vset.pattern.permute.xlu2 %v489_v3  ;;  %68 = vperm.xlu1 %414, %v519_v0   ;;  %v532_v4 = vld [vmem:[%s647_s1 + $0x10] sm:$0xff]  ;;  %v490_v5 = vmov 1   ;;  %v491_v6 = vmov 2   ;;  %v540_v7 = vld [vmem:[%s647_s1] sm:$0xff] }
   0x3   :  { %37 = vperm.xlu0 %413, %v519_v0   ;;  %27 = vperm.xlu2 %416, %v524_v1   ;;  %v492_v8 = vmov 3   ;;  %v15_v17 = vld [vmem:[%s646_s0] sm:$0xff]  ;;  %vm221_vm0 = vcmask 261120   ;;  %s380_s4 = sshll.u32 %s649_s3, 4  ;;  %s381_s4 = int_to_ptr.hbm [resolvable:$true] %s380_s4 }
   0x4   :  { %v41_v19 = vperm.slane %v15_v17, 0  ;;  %v42_v22 = vperm.slane %v15_v17, 4  ;;  %v95_v24 = vperm.slane %v15_v17, 1  ;;  %v96_v25 = vperm.slane %v15_v17, 5 }
   0x5   :  { %v133_v27 = vperm.slane %v15_v17, 2  ;;  %v134_v29 = vperm.slane %v15_v17, 6  ;;  %v171_v33 = vperm.slane %v15_v17, 3  ;;  %v172_v45 = vperm.slane %v15_v17, 7 }
   0x6   :  { %v563_v23 = vperm.slane %v41_v19, 0  ;;  %v565_v26 = vperm.slane %v42_v22, 0  ;;  %v568_v31 = vperm.slane %v95_v24, 1  ;;  %v570_v32 = vperm.slane %v96_v25, 1 }
   0x7   :  { %v577_v39 = vperm.slane %v133_v27, 2  ;;  %v580_v43 = vperm.slane %v134_v29, 2  ;;  %v584_v49 = vperm.slane %v171_v33, 3 }
   0xa   :  { %415 = vset.pattern.permute.xlu1 %v490_v5 }
   0xb   :  { %32 = vperm.xlu0 %413, %v532_v4   ;;  %92 = vperm.xlu1 %415, %v519_v0  }
   0xc   :  { %417 = vset.pattern.permute.xlu2 %v488_v2 }
   0xd   :  { %64 = vperm.xlu2 %417, %v532_v4  }
  0x13   :  { %418 = vset.pattern.permute.xlu0 %v490_v5  ;;  %419 = vset.pattern.permute.xlu1 %v491_v6 }
  0x14   :  { %88 = vperm.xlu0 %418, %v532_v4   ;;  %130 = vperm.xlu1 %419, %v519_v0  }
  0x15   :  { %420 = vset.pattern.permute.xlu2 %v489_v3  ;;  %v593_v3 = vperm.slane %v172_v45, 3 }
  0x16   :  { %22 = vperm.xlu2 %420, %v540_v7  }
  0x1c   :  { %423 = vset.pattern.permute.xlu0 %v491_v6  ;;  %421 = vset.pattern.permute.xlu1 %v488_v2 }
  0x1d   :  { %126 = vperm.xlu0 %423, %v532_v4   ;;  %60 = vperm.xlu1 %421, %v524_v1  }
  0x1e   :  { %422 = vset.pattern.permute.xlu2 %v490_v5 }
  0x1f   :  { %84 = vperm.xlu2 %422, %v524_v1  }
  0x25   :  { %428 = vset.pattern.permute.xlu0 %v492_v8  ;;  %424 = vset.pattern.permute.xlu1 %v492_v8 }
  0x26   :  { %164 = vperm.xlu0 %428, %v532_v4   ;;  %168 = vperm.xlu1 %424, %v519_v0  }
  0x27   :  { %425 = vset.pattern.permute.xlu2 %v488_v2 }
  0x28   :  { %56 = vperm.xlu2 %425, %v540_v7  }
  0x2e   :  { %426 = vset.pattern.permute.xlu1 %v490_v5 }
  0x2f   :  { %80 = vperm.xlu1 %426, %v540_v7  }
  0x30   :  { %427 = vset.pattern.permute.xlu2 %v491_v6 }
  0x31   :  { %122 = vperm.xlu2 %427, %v524_v1  }
  0x37   :  { %429 = vset.pattern.permute.xlu1 %v491_v6 }
  0x38   :  { %118 = vperm.xlu1 %429, %v540_v7  }
  0x39   :  { %430 = vset.pattern.permute.xlu2 %v492_v8 }
  0x3a   :  { %160 = vperm.xlu2 %430, %v524_v1  }
  0x40   :  { %431 = vset.pattern.permute.xlu1 %v492_v8 }
  0x41   :  { %156 = vperm.xlu1 %431, %v540_v7  }
  0x5d   :  { %v28_v9 = vpop.permute.xlu2 %27 }
  0x5e   :  { %v49_v34 = vmul.f32 %v563_v23, %v28_v9  ;;  %v50_v36 = vmul.f32 %v565_v26, %v28_v9 }
  0x67   :  { %v65_v10 = vpop.permute.xlu2 %64 }
  0x70   :  { %v556_v11 = vpop.permute.xlu2 %22 }
  0x74   :  { %v69_v12 = vpop.permute.xlu1 %68 }
  0x75   :  { %v38_v13 = vpop.permute.xlu0 %37 }
  0x76   :  { %v53_v30 = vmul.f32 %v563_v23, %v38_v13  ;;  %v54_v37 = vmul.f32 %v565_v26, %v38_v13 }
  0x78   :  { %v77_v46 = vadd.f32 %v69_v12, %v53_v30  ;;  %v78_v54 = vadd.f32 %v69_v12, %v54_v37 }
  0x79   :  { %v85_v14 = vpop.permute.xlu2 %84 }
  0x7a   :  { %v103_v42 = vmul.f32 %v568_v31, %v85_v14  ;;  %v104_v50 = vmul.f32 %v570_v32, %v85_v14 }
  0x7d   :  { %v93_v15 = vpop.permute.xlu1 %92  ;;  %v33_v16 = vpop.permute.xlu0 %32 }
  0x7e   :  { %v51_v35 = vmul.f32 %v563_v23, %v33_v16  ;;  %v52_v38 = vmul.f32 %v565_v26, %v33_v16  ;;  %v107_v47 = vmul.f32 %v568_v31, %v93_v15  ;;  %v108_v48 = vmul.f32 %v570_v32, %v93_v15 }
  0x80   :  { %v75_v51 = vadd.f32 %v65_v10, %v51_v35  ;;  %v76_v55 = vadd.f32 %v65_v10, %v52_v38  ;;  %v115_v62 = vadd.f32 %v107_v47, %v77_v46  ;;  %v116_v63 = vadd.f32 %v108_v48, %v78_v54 }
  0x81   :  { %v493_v46 = vmov 6   ;;  %v47_v48 = vmul.f32 %v563_v23, %v556_v11 }
  0x82   :  { %v561_v18 = vpop.permute.xlu2 %56  ;;  %434 = vset.pattern.permute.xlu1 %v493_v46  ;;  %433 = vset.pattern.permute.xlu0 %v493_v46 }
  0x83   :  { %214 = vperm.xlu1 %434, %v532_v4   ;;  %210 = vperm.xlu0 %433, %v524_v1   ;;  %v71_v54 = vadd.f32 %v561_v18, %v47_v48 }
  0x84   :  { %432 = vset.pattern.permute.xlu2 %v493_v46 }
  0x85   :  { %206 = vperm.xlu2 %432, %v540_v7  }
  0x86   :  { %v89_v20 = vpop.permute.xlu0 %88  ;;  %v131_v21 = vpop.permute.xlu1 %130 }
  0x87   :  { %v105_v52 = vmul.f32 %v568_v31, %v89_v20  ;;  %v106_v56 = vmul.f32 %v570_v32, %v89_v20  ;;  %v145_v57 = vmul.f32 %v577_v39, %v131_v21  ;;  %v146_v58 = vmul.f32 %v580_v43, %v131_v21 }
  0x89   :  { %v113_v5 = vadd.f32 %v105_v52, %v75_v51  ;;  %v114_v10 = vadd.f32 %v106_v56, %v76_v55  ;;  %v153_v12 = vadd.f32 %v145_v57, %v115_v62  ;;  %v154_v13 = vadd.f32 %v146_v58, %v116_v63 }
  0x8b   :  { %v123_v28 = vpop.permute.xlu2 %122 }
  0x8c   :  { %v141_v59 = vmul.f32 %v577_v39, %v123_v28  ;;  %v142_v6 = vmul.f32 %v580_v43, %v123_v28 }
  0x8d   :  { %218 = vperm.xlu2 %432, %v519_v0  }
  0x8f   :  { %v127_v40 = vpop.permute.xlu0 %126  ;;  %v61_v41 = vpop.permute.xlu1 %60 }
  0x90   :  { %v73_v44 = vadd.f32 %v61_v41, %v49_v34  ;;  %v74_v53 = vadd.f32 %v61_v41, %v50_v36  ;;  %v143_v60 = vmul.f32 %v577_v39, %v127_v40  ;;  %v144_v8 = vmul.f32 %v580_v43, %v127_v40 }
  0x92   :  { %v111_v61 = vadd.f32 %v103_v42, %v73_v44  ;;  %v112_v9 = vadd.f32 %v104_v50, %v74_v53  ;;  %v151_v14 = vadd.f32 %v143_v60, %v113_v5  ;;  %v152_v25 = vadd.f32 %v144_v8, %v114_v10 }
  0x93   :  { %v48_v50 = vmul.f32 %v565_v26, %v556_v11  ;;  %v494_v53 = vmov 5  }
  0x94   :  { %v161_v2 = vpop.permute.xlu2 %160  ;;  %v149_v19 = vadd.f32 %v141_v59, %v111_v61  ;;  %v150_v28 = vadd.f32 %v142_v6, %v112_v9  ;;  %435 = vset.pattern.permute.xlu1 %v494_v53  ;;  %437 = vset.pattern.permute.xlu0 %v494_v53 }
  0x95   :  { %v179_v15 = vmul.f32 %v584_v49, %v161_v2  ;;  %v180_v27 = vmul.f32 %v593_v3, %v161_v2  ;;  %301 = vperm.xlu1 %435, %v540_v7   ;;  %309 = vperm.xlu0 %437, %v532_v4   ;;  %v72_v55 = vadd.f32 %v561_v18, %v48_v50 }
  0x96   :  { %436 = vset.pattern.permute.xlu2 %v494_v53 }
  0x97   :  { %v187_v37 = vadd.f32 %v179_v15, %v149_v19  ;;  %v188_v38 = vadd.f32 %v180_v27, %v150_v28  ;;  %305 = vperm.xlu2 %436, %v524_v1   ;;  %v204_v1 = vld [vmem:[%s648_s2 + $0x18] sm:$0xff] }
  0x98   :  { %v165_v16 = vpop.permute.xlu0 %164  ;;  %v169_v17 = vpop.permute.xlu1 %168 }
  0x99   :  { %v181_v20 = vmul.f32 %v584_v49, %v165_v16  ;;  %v182_v21 = vmul.f32 %v593_v3, %v165_v16  ;;  %v183_v22 = vmul.f32 %v584_v49, %v169_v17  ;;  %v184_v24 = vmul.f32 %v593_v3, %v169_v17 }
  0x9a   :  { %v195_v44 = vmax.f32 %v187_v37, 0.0  ;;  %v196_v45 = vmax.f32 %v188_v38, 0.0 }
  0x9b   :  { %v191_v29 = vadd.f32 %v183_v22, %v153_v12  ;;  %v192_v30 = vadd.f32 %v184_v24, %v154_v13  ;;  %v189_v33 = vadd.f32 %v181_v20, %v151_v14  ;;  %v190_v34 = vadd.f32 %v182_v21, %v152_v25 }
  0x9d   :  { %v199_v35 = vmax.f32 %v191_v29, 0.0  ;;  %v200_v36 = vmax.f32 %v192_v30, 0.0  ;;  %v197_v40 = vmax.f32 %v189_v33, 0.0  ;;  %v198_v41 = vmax.f32 %v190_v34, 0.0  ;;  %313 = vperm.xlu1 %435, %v519_v0   ;;  %v202_v0 = vld [vmem:[%s648_s2 + $0x8] sm:$0xff] }
  0x9f   :  { %246 = vmatpush.msra.mxu0 %v199_v35  ;;  %397 = vmatpush.msra.mxu2 %v199_v35 }
  0xa0   :  { %275 = vmatpush.msra.mxu1 %v200_v36  ;;  %401 = vmatpush.msra.mxu3 %v200_v36 }
  0xa1   :  { %v81_v42 = vpop.permute.xlu1 %80  ;;  %247 = vmatpush.msra.mxu0 %v197_v40  ;;  %398 = vmatpush.msra.mxu2 %v197_v40 }
  0xa2   :  { %276 = vmatpush.msra.mxu1 %v198_v41  ;;  %402 = vmatpush.msra.mxu3 %v198_v41  ;;  %v101_v51 = vmul.f32 %v568_v31, %v81_v42  ;;  %v102_v52 = vmul.f32 %v570_v32, %v81_v42 }
  0xa3   :  { %248 = vmatpush.msra.mxu0 %v195_v44  ;;  %399 = vmatpush.msra.mxu2 %v195_v44 }
  0xa4   :  { %277 = vmatpush.msra.mxu1 %v196_v45  ;;  %403 = vmatpush.msra.mxu3 %v196_v45  ;;  %v109_v11 = vadd.f32 %v101_v51, %v71_v54  ;;  %v110_v26 = vadd.f32 %v102_v52, %v72_v55 }
  0xaa   :  { %v119_v47 = vpop.permute.xlu1 %118 }
  0xab   :  { %v139_v23 = vmul.f32 %v577_v39, %v119_v47  ;;  %v140_v56 = vmul.f32 %v580_v43, %v119_v47  ;;  %v201_v39 = vld [vmem:[%s648_s2] sm:$0xff]  ;;  %v203_v43 = vld [vmem:[%s648_s2 + $0x10] sm:$0xff]  ;;  %s495_s2 = smov [#allocation2]  }
  0xac   :  { %s378_s28 = sshll.u32 %s495_s2, 4  ;;  %s379_s28 = int_to_ptr.vmem [resolvable:$true] %s378_s28 }
  0xad   :  { %v147_v32 = vadd.f32 %v139_v23, %v109_v11  ;;  %v148_v57 = vadd.f32 %v140_v56, %v110_v26  ;;  %v342_v56 = vlaneseq }
  0xb3   :  { %v157_v31 = vpop.permute.xlu1 %156 }
  0xb4   :  { %v177_v58 = vmul.f32 %v584_v49, %v157_v31  ;;  %v178_v7 = vmul.f32 %v593_v3, %v157_v31 }
  0xb6   :  { %v185_v4 = vadd.f32 %v177_v58, %v147_v32  ;;  %v186_v59 = vadd.f32 %v178_v7, %v148_v57  ;;  %v343_v57 = vand.u32 127, %v342_v56 }
  0xb8   :  { %v193_v18 = vmax.f32 %v185_v4, 0.0  ;;  %v194_v60 = vmax.f32 %v186_v59, 0.0  ;;  %vm344_vm1 = vcmp.lt.s32.totalorder %v343_v57, 8 }
  0xba   :  { %249 = vmatpush.msra.mxu0 %v193_v18  ;;  %400 = vmatpush.msra.mxu2 %v193_v18 }
  0xbb   :  { %278 = vmatpush.msra.mxu1 %v194_v60  ;;  %404 = vmatpush.msra.mxu3 %v194_v60 }
  0xbc   :  { %389 = vmatmul.msk.f32.vlgmr.msra.gmra.mxu0 %vm221_vm0, %v201_v39  ;;  %391 = vmatmul.msk.f32.vlgmr.msra.gmra.mxu2 %vm221_vm0, %v203_v43 }
  0xbd   :  { %393 = vmatmul.msk.f32.vlgmr.msra.gmra.mxu1 %vm221_vm0, %v201_v39  ;;  %395 = vmatmul.msk.f32.vlgmr.msra.gmra.mxu3 %vm221_vm0, %v203_v43 }
  0xc4   :  { %390 = vmatmul.msk.f32.gmra.mxu0 %vm221_vm0, %v202_v0  ;;  %392 = vmatmul.msk.f32.gmra.mxu2 %vm221_vm0, %v204_v1 }
  0xc5   :  { %394 = vmatmul.msk.f32.gmra.mxu1 %vm221_vm0, %v202_v0  ;;  %396 = vmatmul.msk.f32.gmra.mxu3 %vm221_vm0, %v204_v1 }
  0xdf   :  { %v207_v49 = vpop.permute.xlu2 %206 }
  0xe7   :  { %v219_v8 = vpop.permute.xlu2 %218 }
  0xf1   :  { %v306_v24 = vpop.permute.xlu2 %305 }
  0xf5   :  { %v215_v63 = vpop.permute.xlu1 %214  ;;  %v211_v6 = vpop.permute.xlu0 %210 }
 0x107   :  { %v302_v17 = vpop.permute.xlu1 %301  ;;  %v310_v36 = vpop.permute.xlu0 %309 }
 0x10f   :  { %v314_v46 = vpop.permute.xlu1 %313 }
 0x139   :  { %v251_v61 = vpop.f32.mrf.mxu0 }
 0x13a   :  { %v280_v62 = vpop.f32.mrf.mxu1  ;;  %v252_v2 = vadd.f32 %v251_v61, %v207_v49 }
 0x13b   :  { %v281_v3 = vadd.f32 %v280_v62, %v207_v49 }
 0x13c   :  { %438 = vtanh.f32 %v252_v2 }
 0x13d   :  { %440 = vtanh.f32 %v281_v3 }
 0x13f   :  { %v257_v5 = vpop.f32.mrf.mxu2 }
 0x140   :  { %v286_v9 = vpop.f32.mrf.mxu3  ;;  %v258_v12 = vadd.f32 %v257_v5, %v215_v63 }
 0x141   :  { %v254_v10 = vpop.f32.mrf.mxu0  ;;  %v287_v15 = vadd.f32 %v286_v9, %v215_v63 }
 0x142   :  { %v255_v13 = vadd.f32 %v254_v10, %v211_v6  ;;  %v283_v14 = vpop.f32.mrf.mxu1  ;;  %v439_v20 = vpop.eup %438 }
 0x143   :  { %v284_v16 = vadd.f32 %v283_v14, %v211_v6  ;;  %v441_v25 = vpop.eup %440  ;;  %v316_v30 = vmul.f32 %v439_v20, %v302_v17 }
 0x144   :  { %442 = vtanh.f32 %v255_v13  ;;  %v317_v35 = vmul.f32 %v441_v25, %v302_v17 }
 0x145   :  { %444 = vtanh.f32 %v284_v16 }
 0x146   :  { %446 = vtanh.f32 %v258_v12 }
 0x147   :  { %448 = vtanh.f32 %v287_v15  ;;  %v260_v19 = vpop.f32.mrf.mxu2 }
 0x148   :  { %v261_v21 = vadd.f32 %v260_v19, %v219_v8  ;;  %v289_v22 = vpop.f32.mrf.mxu3 }
 0x149   :  { %v290_v27 = vadd.f32 %v289_v22, %v219_v8 }
 0x14a   :  { %v443_v28 = vpop.eup %442  ;;  %450 = vtanh.f32 %v261_v21 }
 0x14b   :  { %v445_v29 = vpop.eup %444  ;;  %452 = vtanh.f32 %v290_v27  ;;  %v318_v33 = vmul.f32 %v443_v28, %v306_v24 }
 0x14c   :  { %v447_v34 = vpop.eup %446  ;;  %v319_v37 = vmul.f32 %v445_v29, %v306_v24 }
 0x14d   :  { %v449_v38 = vpop.eup %448  ;;  %v324_v40 = vadd.f32 %v318_v33, %v316_v30  ;;  %v320_v42 = vmul.f32 %v447_v34, %v310_v36 }
 0x14e   :  { %v333_v41 = vadd.f32 %v319_v37, %v317_v35  ;;  %v321_v45 = vmul.f32 %v449_v38, %v310_v36 }
 0x14f   :  { %v325_v50 = vadd.f32 %v324_v40, %v320_v42 }
 0x150   :  { %v451_v44 = vpop.eup %450  ;;  %v334_v52 = vadd.f32 %v333_v41, %v321_v45 }
 0x151   :  { %v453_v47 = vpop.eup %452  ;;  %v322_v48 = vmul.f32 %v451_v44, %v314_v46 }
 0x152   :  { %v323_v51 = vmul.f32 %v453_v47, %v314_v46 }
 0x153   :  { %v326_v53 = vadd.f32 %v325_v50, %v322_v48 }
 0x154   :  { %v335_v54 = vadd.f32 %v334_v52, %v323_v51 }
 0x155   :  { %v327_v55 = vrot.slane %v326_v53, 4 }
 0x156   :  { %v336_v23 = vrot.slane %v335_v54, 4 }
 0x157   :  { %v328_v11 = vadd.f32 %v327_v55, %v326_v53 }
 0x158   :  { %v337_v26 = vadd.f32 %v336_v23, %v335_v54 }
 0x159   :  { %v329_v31 = vrot.slane %v328_v11, 2 }
 0x15a   :  { %v338_v32 = vrot.slane %v337_v26, 2 }
 0x15b   :  { %v330_v58 = vadd.f32 %v329_v31, %v328_v11 }
 0x15c   :  { %v339_v7 = vadd.f32 %v338_v32, %v337_v26 }
 0x15d   :  { %v331_v4 = vrot.slane %v330_v58, 1 }
 0x15e   :  { %v340_v59 = vrot.slane %v339_v7, 1 }
 0x15f   :  { %v332_v18 = vadd.f32 %v331_v4, %v330_v58 }
 0x160   :  { %v341_v60 = vadd.f32 %v340_v59, %v339_v7 }
 0x161   :  { %v345_v39 = vsel %vm344_vm1, %v332_v18, -1e+30 }
 0x162   :  { %v359_v43 = vsel %vm344_vm1, %v341_v60, -1e+30  ;;  %346 = vmax.xlane.f32.xlu2 %v345_v39 }
 0x163   :  { %360 = vmax.xlane.f32.xlu1 %v359_v43 }
 0x1d5   :  { %v347_v0 = vpop.xlane.xlu2 %346 }
 0x1d6   :  { %v361_v1 = vpop.xlane.xlu1 %360  ;;  %v348_v49 = vsub.f32 %v345_v39, %v347_v0 }
 0x1d7   :  { %v362_v61 = vsub.f32 %v359_v43, %v361_v1 }
 0x1d8   :  { %v349_v62 = vmul.f32 1.442695, %v348_v49 }
 0x1d9   :  { %v363_v63 = vmul.f32 1.442695, %v362_v61 }
 0x1da   :  { %454 = vpow2.f32 %v349_v62 }
 0x1db   :  { %456 = vpow2.f32 %v363_v63 }
 0x1e0   :  { %v455_v2 = vpop.eup %454 }
 0x1e1   :  { %v457_v3 = vpop.eup %456  ;;  %351 = vadd.xlane.f32.xlu0 %v455_v2 }
 0x1e2   :  { %365 = vadd.xlane.f32.xlu2 %v457_v3 }
 0x254   :  { %v352_v5 = vpop.xlane.xlu0 %351 }
 0x255   :  { %458 = vrcp.f32 %v352_v5  ;;  %v366_v6 = vpop.xlane.xlu2 %365 }
 0x256   :  { %460 = vrcp.f32 %v366_v6 }
 0x25b   :  { %v459_v8 = vpop.eup %458 }
 0x25c   :  { %v461_v9 = vpop.eup %460  ;;  %v354_v10 = vmul.f32 %v459_v8, %v352_v5 }
 0x25d   :  { %v368_v12 = vmul.f32 %v461_v9, %v366_v6 }
 0x25e   :  { %v355_v13 = vsub.f32 2.0, %v354_v10 }
 0x25f   :  { %v369_v14 = vsub.f32 2.0, %v368_v12 }
 0x260   :  { %v356_v15 = vmul.f32 %v459_v8, %v355_v13 }
 0x261   :  { %v370_v16 = vmul.f32 %v461_v9, %v369_v14 }
 0x262   :  { %v357_v17 = vmul.f32 %v455_v2, %v356_v15 }
 0x263   :  { %v371_v19 = vmul.f32 %v457_v3, %v370_v16 }
 0x264   :  { %358 = vst [vmem:[#allocation2] sm:$0x1] %v357_v17 }
 0x265   :  { %372 = vst [vmem:[#allocation2 + $0x1] sm:$0x1] %v371_v19 }
 0x266   :  { %383 = dma.vmem_to_hbm [thread:$0]  %s379_s28, 32, %s381_s4, [#allocation3]  }
 0x267   :  { %486 = dma.done.wait [#allocation3], 32  }
 0x268   :  { %487 = vsyncadd [#allocation3], 4294967264 }
 0x269   :  { %388 = vsyncpa [#allocation3], 1 }

</bundles_post_ra>
